<compile_context>
chip_gen: v7x
topology: tpu7x:2x2x1
jax: 0.10.0
libtpu: 0.0.40
codegen_flags: <defaults>
</compile_context>

<pallas_src>
import math
import jax
import jax.numpy as jnp
from jax.experimental import pallas as pl
from jax.experimental.pallas import tpu as pltpu

F_PAD = 128            # conv channels / Q-head outputs padded to one full lane width
CONV_ROW_TILE = 512    # M-row tile for the im2col matmul (fits VMEM on v5e/v6e/v7x)
TAIL_ROW_TILE = 64     # batch-row tile for the fused fc+LN+twin-Q kernel
VMEM_LIMIT = 32 * 1024 * 1024


def _round_up(x, m):
    return ((x + m - 1) // m) * m


def _pick_tile(dim, target):
    """Largest legal block size: full dim if it fits, else a multiple of 8 <= target."""
    if dim <= target:
        return dim
    return max(8, (target // 8) * 8)


# ---------------- Pallas kernels ----------------

def _matmul_bias_relu_kernel(x_ref, w_ref, b_ref, o_ref):
    # o = relu(x @ w + b)  -- conv hot path (bf16 operands, f32 accumulation)
    acc = jnp.dot(x_ref[...], w_ref[...], preferred_element_type=jnp.float32)
    o_ref[...] = jnp.maximum(acc + b_ref[...], 0.0).astype(o_ref.dtype)


def _encoder_tail_twin_q_kernel(
        flat_ref, act_ref, fcw_ref, fcb_ref, g_ref, beta_ref,
        q1_w1f, q1_w1a, q1_b1, q1_w2, q1_b2, q1_w3, q1_b3,
        q2_w1f, q2_w1a, q2_b1, q2_w2, q2_b2, q2_w3, q2_b3,
        q1_out, q2_out):
    # Encoder fc + LayerNorm (PyTorch defaults: eps=1e-5, biased variance; no tanh).
    y = jnp.dot(flat_ref[...], fcw_ref[...],
                preferred_element_type=jnp.float32) + fcb_ref[...]
    mean = jnp.mean(y, axis=-1, keepdims=True)
    var = jnp.mean(jnp.square(y - mean), axis=-1, keepdims=True)
    feat = (y - mean) * jax.lax.rsqrt(var + 1e-5) * g_ref[...] + beta_ref[...]
    feat = feat.astype(jnp.bfloat16)
    act = act_ref[...]

    def q_head(w1f, w1a, b1, w2, b2, w3, b3):
        # cat([feat, act]) @ w1  ==  feat @ w1f + act @ w1a  (concat avoided)
        h1 = (jnp.dot(feat, w1f[...], preferred_element_type=jnp.float32)
              + jnp.dot(act, w1a[...], preferred_element_type=jnp.float32)
              + b1[...])
        h1 = jnp.maximum(h1, 0.0).astype(jnp.bfloat16)
        h2 = jnp.dot(h1, w2[...], preferred_element_type=jnp.float32) + b2[...]
        h2 = jnp.maximum(h2, 0.0).astype(jnp.bfloat16)
        # w3 padded to 128 output lanes (only column 0 is real) -> lane-dense store
        return jnp.dot(h2, w3[...], preferred_element_type=jnp.float32) + b3[...]

    q1_out[...] = q_head(q1_w1f, q1_w1a, q1_b1, q1_w2, q1_b2, q1_w3, q1_b3)
    q2_out[...] = q_head(q2_w1f, q2_w1a, q2_b1, q2_w2, q2_b2, q2_w3, q2_b3)


# ---------------- Pallas call wrappers ----------------

def _conv_matmul_relu(patches, w_mat, bias):
    """patches: (M, Kp) bf16, w_mat: (Kp, F_PAD) bf16, bias: (1, F_PAD) f32."""
    M, Kp = patches.shape
    Fp = w_mat.shape[1]
    tm = _pick_tile(M, CONV_ROW_TILE)
    grid = (pl.cdiv(M, tm),)
    cost = pl.CostEstimate(
        flops=int(2 * M * Kp * Fp), transcendentals=0,
        bytes_accessed=int(patches.size * 2 + w_mat.size * 2 + bias.size * 4 + M * Fp * 2))
    return pl.pallas_call(
        _matmul_bias_relu_kernel,
        out_shape=jax.ShapeDtypeStruct((M, Fp), jnp.bfloat16),
        grid=grid,
        in_specs=[
            pl.BlockSpec((tm, Kp), lambda i: (i, 0)),
            pl.BlockSpec((Kp, Fp), lambda i: (0, 0)),
            pl.BlockSpec((1, Fp), lambda i: (0, 0)),
        ],
        out_specs=pl.BlockSpec((tm, Fp), lambda i: (i, 0)),
        compiler_params=pltpu.CompilerParams(
            dimension_semantics=("parallel",),
            vmem_limit_bytes=VMEM_LIMIT),
        cost_estimate=cost,
    )(patches, w_mat, bias)


def _tail_twin_q(flat, action, kp):
    """Fused encoder-fc + LayerNorm + twin Q MLPs. Returns (q1, q2) of shape (N, 1)."""
    N, Dp = flat.shape
    A = action.shape[1]
    fd = kp['fc_w'].shape[1]
    hd = kp['q1']['w2'].shape[0]
    tn = _pick_tile(N, TAIL_ROW_TILE)
    grid = (pl.cdiv(N, tn),)

    def full_spec(x):
        return pl.BlockSpec(x.shape, lambda i: (0, 0))

    args = [flat, action, kp['fc_w'], kp['fc_b'], kp['ln_g'], kp['ln_b']]
    in_specs = [
        pl.BlockSpec((tn, Dp), lambda i: (i, 0)),
        pl.BlockSpec((tn, A), lambda i: (i, 0)),
        full_spec(kp['fc_w']), full_spec(kp['fc_b']),
        full_spec(kp['ln_g']), full_spec(kp['ln_b']),
    ]
    for head in ('q1', 'q2'):
        for name in ('w1f', 'w1a', 'b1', 'w2', 'b2', 'w3', 'b3'):
            arr = kp[head][name]
            args.append(arr)
            in_specs.append(full_spec(arr))

    flops = 2 * N * Dp * fd + 2 * (2 * N * ((fd + A) * hd + hd * hd + hd * F_PAD))
    bytes_accessed = sum(int(a.size) * a.dtype.itemsize for a in args) + 2 * N * F_PAD * 4
    cost = pl.CostEstimate(flops=int(flops), transcendentals=int(N),
                           bytes_accessed=int(bytes_accessed))

    # TODO(synk): for very large flat_dim (e.g. 84x84 obs at batch 512), grid the
    # fc contraction (K) axis with a VMEM accumulator + pl.when finalize; at the
    # shapes used here the whole row tile fits comfortably in VMEM.
    q1p, q2p = pl.pallas_call(
        _encoder_tail_twin_q_kernel,
        out_shape=[jax.ShapeDtypeStruct((N, F_PAD), jnp.float32),
                   jax.ShapeDtypeStruct((N, F_PAD), jnp.float32)],
        grid=grid,
        in_specs=in_specs,
        out_specs=[pl.BlockSpec((tn, F_PAD), lambda i: (i, 0)),
                   pl.BlockSpec((tn, F_PAD), lambda i: (i, 0))],
        compiler_params=pltpu.CompilerParams(
            dimension_semantics=("parallel",),
            vmem_limit_bytes=VMEM_LIMIT),
        cost_estimate=cost,
    )(*args)
    return q1p[:, :1], q2p[:, :1]


# ---------------- JAX glue ----------------

def _im2col_nhwc(x, k, stride):
    """x: (N, H, W, C) -> patches (N*OH*OW, k*k*C), K ordered (kh, kw, c)."""
    N, H, W, C = x.shape
    OH = (H - k) // stride + 1
    OW = (W - k) // stride + 1
    cols = []
    for kh in range(k):
        for kw in range(k):
            cols.append(x[:, kh:kh + stride * OH:stride, kw:kw + stride * OW:stride, :])
    patches = jnp.stack(cols, axis=3)            # (N, OH, OW, k*k, C)
    return patches.reshape(N * OH * OW, k * k * C), OH, OW


def init_params(key, obs_shape, action_dim, hidden_dim, feature_dim,
                num_layers, num_filters):
    """PyTorch-layout params reproducing the module's weight_init() semantics."""
    C, H, W = obs_shape
    relu_gain = math.sqrt(2.0)  # nn.init.calculate_gain('relu')
    keys = iter(jax.random.split(key, num_layers + 1 + 6))
    params = {}

    # convs: weight 0 everywhere except orthogonal(gain=sqrt(2)) at center; bias 0
    convs, strides = [], []
    in_ch, h, w = C, H, W
    for i in range(num_layers):
        stride = 2 if i == 0 else 1
        wconv = jnp.zeros((num_filters, in_ch, 3, 3), jnp.float32)
        center = jax.nn.initializers.orthogonal(scale=relu_gain)(
            next(keys), (num_filters, in_ch), jnp.float32)
        wconv = wconv.at[:, :, 1, 1].set(center)  # mid = 3 // 2 = 1
        convs.append((wconv, jnp.zeros((num_filters,), jnp.float32)))
        strides.append(stride)
        in_ch = num_filters
        h = (h - 3) // stride + 1
        w = (w - 3) // stride + 1
    params['convs'] = convs

    flat_dim = num_filters * h * w
    params['fc_w'] = jax.nn.initializers.orthogonal()(next(keys), (feature_dim, flat_dim), jnp.float32)
    params['fc_b'] = jnp.zeros((feature_dim,), jnp.float32)
    params['ln_g'] = jnp.ones((feature_dim,), jnp.float32)
    params['ln_b'] = jnp.zeros((feature_dim,), jnp.float32)

    def q_params():
        in_dim = feature_dim + action_dim
        return dict(
            w1=jax.nn.initializers.orthogonal()(next(keys), (hidden_dim, in_dim), jnp.float32),
            b1=jnp.zeros((hidden_dim,), jnp.float32),
            w2=jax.nn.initializers.orthogonal()(next(keys), (hidden_dim, hidden_dim), jnp.float32),
            b2=jnp.zeros((hidden_dim,), jnp.float32),
            w3=jax.nn.initializers.orthogonal()(next(keys), (1, hidden_dim), jnp.float32),
            b3=jnp.zeros((1,), jnp.float32),
        )
    params['q1'] = q_params()
    params['q2'] = q_params()
    return params, strides


def prepare_params(params, strides, obs_shape):
    """One-time conversion to kernel-ready layout: (in, out) bf16 matmul weights,
    conv channels zero-padded to F_PAD, fc weight permuted for NHWC flatten."""
    C, H, W = obs_shape
    kp = {'convs': []}
    in_ch_act = C              # channel count of the NHWC activation fed to this layer
    h, w = H, W
    for (wconv, bconv), stride in zip(params['convs'], strides):
        F_out, C_in, kh, kw = wconv.shape
        # zero weight rows for the zero-padded activation channels of the previous layer
        wpad = jnp.pad(wconv, ((0, 0), (0, in_ch_act - C_in), (0, 0), (0, 0)))
        wm = jnp.transpose(wpad, (2, 3, 1, 0)).reshape(kh * kw * in_ch_act, F_out)
        K = wm.shape[0]
        Kp = _round_up(K, 128)
        wm = jnp.pad(wm, ((0, Kp - K), (0, F_PAD - F_out)))
        bb = jnp.pad(bconv, (0, F_PAD - F_out)).reshape(1, F_PAD).astype(jnp.float32)
        kp['convs'].append((wm.astype(jnp.bfloat16), bb, stride))
        in_ch_act = F_PAD
        h = (h - 3) // stride + 1
        w = (w - 3) // stride + 1

    nf = params['convs'][-1][0].shape[0]
    feature_dim = params['fc_w'].shape[0]
    # torch flattens NCHW (c, h, w); permute columns to our NHWC-padded (h, w, c_pad)
    fcw = params['fc_w'].reshape(feature_dim, nf, h, w)
    fcw = jnp.transpose(fcw, (2, 3, 1, 0))                          # (h, w, c, fd)
    fcw = jnp.pad(fcw, ((0, 0), (0, 0), (0, F_PAD - nf), (0, 0)))   # zero rows for pad ch.
    kp['fc_w'] = fcw.reshape(h * w * F_PAD, feature_dim).astype(jnp.bfloat16)
    kp['fc_b'] = params['fc_b'].reshape(1, -1).astype(jnp.float32)
    kp['ln_g'] = params['ln_g'].reshape(1, -1).astype(jnp.float32)
    kp['ln_b'] = params['ln_b'].reshape(1, -1).astype(jnp.float32)

    def prep_q(q):
        w1 = q['w1']  # (hidden, feature_dim + action_dim)
        return dict(
            w1f=jnp.transpose(w1[:, :feature_dim]).astype(jnp.bfloat16),
            w1a=jnp.transpose(w1[:, feature_dim:]).astype(jnp.bfloat16),
            b1=q['b1'].reshape(1, -1).astype(jnp.float32),
            w2=jnp.transpose(q['w2']).astype(jnp.bfloat16),
            b2=q['b2'].reshape(1, -1).astype(jnp.float32),
            w3=jnp.pad(jnp.transpose(q['w3']), ((0, 0), (0, F_PAD - 1))).astype(jnp.bfloat16),
            b3=jnp.pad(q['b3'], (0, F_PAD - 1)).reshape(1, F_PAD).astype(jnp.float32),
        )
    kp['q1'] = prep_q(params['q1'])
    kp['q2'] = prep_q(params['q2'])
    return kp


def critic_forward(kp, obs, action):
    """obs: (N, C, H, W) pixels in [0, 255]; action: (N, action_dim). Returns (q1, q2)."""
    N = obs.shape[0]
    x = obs.astype(jnp.float32) / 255.0                       # PixelEncoder normalization
    x = jnp.transpose(x, (0, 2, 3, 1)).astype(jnp.bfloat16)   # NCHW -> NHWC once at entry

    # TODO(synk): fuse im2col into the conv kernel (in-VMEM shifted/strided slices)
    # to avoid materializing the 9x-duplicated patch matrix in HBM.
    for (w_mat, bias, stride) in kp['convs']:
        patches, OH, OW = _im2col_nhwc(x, 3, stride)
        Kp = w_mat.shape[0]
        if patches.shape[1] < Kp:                             # first layer: pad K to 128
            patches = jnp.pad(patches, ((0, 0), (0, Kp - patches.shape[1])))
        out = _conv_matmul_relu(patches, w_mat, bias)
        x = out.reshape(N, OH, OW, F_PAD)                     # stay NHWC (no transpose)

    flat = x.reshape(N, -1)
    return _tail_twin_q(flat, action.astype(jnp.bfloat16), kp)


if __name__ == "__main__":
    key = jax.random.PRNGKey(0)
    obs_shape = (4, 16, 16)     # (C, H, W)
    action_dim = 6
    batch = 2
    hidden_dim = 32
    encoder_feature_dim = 16
    num_layers = 2
    num_filters = 8

    pkey, okey, akey = jax.random.split(key, 3)
    params, strides = init_params(pkey, obs_shape, action_dim, hidden_dim,
                                  encoder_feature_dim, num_layers, num_filters)
    kparams = prepare_params(params, strides, obs_shape)

    obs = jax.random.uniform(okey, (batch,) + obs_shape, jnp.float32, 0.0, 255.0)
    action = jax.random.uniform(akey, (batch, action_dim), jnp.float32, -1.0, 1.0)

    q1, q2 = critic_forward(kparams, obs, action)
    jax.block_until_ready((q1, q2))

    assert q1.shape == (batch, 1) and q2.shape == (batch, 1)
    assert bool(jnp.all(jnp.isfinite(q1))) and bool(jnp.all(jnp.isfinite(q2)))
    print("KERNEL_OK")
</pallas_src>

<mosaic_0001>
module attributes {stable_mosaic.version = 11 : i64} {
  func.func @_matmul_bias_relu_kernel(%arg0: i32, %arg1: memref<98x128xbf16, #tpu.memory_space<vmem>>, %arg2: memref<128x128xbf16, #tpu.memory_space<vmem>>, %arg3: memref<1x128xf32, #tpu.memory_space<vmem>>, %arg4: memref<98x128xbf16, #tpu.memory_space<vmem>>) attributes {dimension_semantics = [#tpu.dimension_semantics<parallel>], iteration_bounds = array<i64: 1>, scalar_prefetch = 0 : i64, scratch_operands = 0 : i64, tpu.core_type = #tpu.core_type<tc>, window_params = [{transform_indices = @transform_0, window_bounds = array<i64: 98, 128>}, {pipeline_mode = #tpu.pipeline_mode<synchronous>, transform_indices = @transform_1, window_bounds = array<i64: 128, 128>}, {pipeline_mode = #tpu.pipeline_mode<synchronous>, transform_indices = @transform_2, window_bounds = array<i64: 1, 128>}, {transform_indices = @transform_3, window_bounds = array<i64: 98, 128>}]} {
    %c0 = arith.constant 0 : index
    %c0_0 = arith.constant 0 : index
    %0 = vector.load %arg1[%c0, %c0_0] : memref<98x128xbf16, #tpu.memory_space<vmem>>, vector<98x128xbf16>
    %c0_1 = arith.constant 0 : index
    %c0_2 = arith.constant 0 : index
    %1 = vector.load %arg2[%c0_1, %c0_2] : memref<128x128xbf16, #tpu.memory_space<vmem>>, vector<128x128xbf16>
    %cst = arith.constant dense<0.000000e+00> : vector<98x128xf32>
    %2 = tpu.matmul %0, %1, %cst {dimension_numbers = #tpu.dot_dimension_numbers<[1], [0], [0], [1], [0, 0, 1, 1], [], []>} : vector<98x128xbf16>, vector<128x128xbf16>, vector<98x128xf32> -> vector<98x128xf32>
    %c0_3 = arith.constant 0 : index
    %c0_4 = arith.constant 0 : index
    %3 = vector.load %arg3[%c0_3, %c0_4] : memref<1x128xf32, #tpu.memory_space<vmem>>, vector<1x128xf32>
    %4 = vector.broadcast %3 : vector<1x128xf32> to vector<98x128xf32>
    %5 = arith.addf %2, %4 : vector<98x128xf32>
    %cst_5 = arith.constant 0.000000e+00 : f32
    %6 = vector.broadcast %cst_5 : f32 to vector<98x128xf32>
    %7 = arith.maximumf %5, %6 : vector<98x128xf32>
    %8 = arith.truncf %7 : vector<98x128xf32> to vector<98x128xbf16>
    %c0_6 = arith.constant 0 : index
    %c0_7 = arith.constant 0 : index
    %9 = vector.load %arg4[%c0_6, %c0_7] : memref<98x128xbf16, #tpu.memory_space<vmem>>, vector<98x128xbf16>
    tpu.vector_store %arg4[%c0_6, %c0_7], %8 {strides = array<i32>} : memref<98x128xbf16, #tpu.memory_space<vmem>>, vector<98x128xbf16>,
    return
  }
  func.func @transform_0(%arg0: i32) -> (i32, i32) {
    %c0_i32 = arith.constant 0 : i32
    %c0_i32_0 = arith.constant 0 : i32
    return %arg0, %c0_i32 : i32, i32
  }
  func.func @transform_1(%arg0: i32) -> (i32, i32) {
    %c0_i32 = arith.constant 0 : i32
    %c0_i32_0 = arith.constant 0 : i32
    %c0_i32_1 = arith.constant 0 : i32
    return %c0_i32, %c0_i32_0 : i32, i32
  }
  func.func @transform_2(%arg0: i32) -> (i32, i32) {
    %c0_i32 = arith.constant 0 : i32
    %c0_i32_0 = arith.constant 0 : i32
    %c0_i32_1 = arith.constant 0 : i32
    return %c0_i32, %c0_i32_0 : i32, i32
  }
  func.func @transform_3(%arg0: i32) -> (i32, i32) {
    %c0_i32 = arith.constant 0 : i32
    %c0_i32_0 = arith.constant 0 : i32
    return %arg0, %c0_i32 : i32, i32
  }
}

</mosaic_0001>

<bundles_post_ra>
// kernel: tpu_custom_call.1
= control target key start
LH: loop header
LB: loop body
LE: loop exit
PB: predicated region body
PF: predicated region fallthrough
CT: control target
= control target key end

     0   :  { %8 = vsyncpa [#allocation3], 0  ;;  %s696_s0 = inlined_call_operand.hbm [shape: bf16[98,128], index: 0, kind: input, shape index: {}]   ;;  %s697_s1 = inlined_call_operand.hbm [shape: bf16[128,128], index: 1, kind: input, shape index: {}]   ;;  %s698_s2 = inlined_call_operand.vmem [shape: f32[1,128], index: 2, kind: input, shape index: {}]   ;;  %s699_s3 = inlined_call_operand.hbm [shape: bf16[98,128], index: 3, kind: output, shape index: {}]  }
   0x1   :  { %9 = vsyncpa [#allocation6], 0 }
   0x2   :  { %10 = vsyncpa [#allocation4], 0  ;;  %s599_s12 = smov [#allocation2]   ;;  %s527_s16 = scalar_lea.hbm %s696_s0, 832 }
   0x3   :  { %s16_s13 = sshll.u32 %s599_s12, 4  ;;  %p528_p0 = scmp.ne.s32.totalorder %s696_s0, %s527_s16  ;;  %s17_s13 = int_to_ptr.vmem [resolvable:$true] %s16_s13 }
   0x4   :  { %p531_p1 = scmp.lt.u32.totalorder %s527_s16, %s696_s0 }
   0x6   :  { %p533_p2 = pnand %p531_p1, %p528_p0 }
   0x8   :  { %536 = shalt.err (!%p533_p2)
}
   0x9   :  { %s537_s21 = scalar_lea.vmem %s17_s13, 832  ;;  %p542_p4 = scmp.lt.s32.totalorder %s17_s13, %s17_s13 }
   0xa   :  { %p538_p3 = scmp.ne.s32.totalorder %s17_s13, %s537_s21  ;;  %p543_p5 = scmp.lt.s32.totalorder %s537_s21, %s537_s21 }
   0xc   :  { %p544_p6 = por %p543_p5, %p542_p4 }
   0xe   :  { %p545_p7 = pnand %p544_p6, %p538_p3 }
  0x10   :  { %548 = shalt.err (!%p545_p7)
}
  0x11   :  { %s600_s22 = smov 64   ;;  %s601_s23 = smov 4  }
  0x12   :  { %22 = dma.hbm_to_vmem [thread:$0]  %s696_s0, 832, %s17_s13, [#allocation3], %s600_s22, %s600_s22, %s601_s23  }
  0x13   :  { %s602_s26 = smov [#allocation5]   ;;  %s549_s30 = scalar_lea.hbm %s697_s1, 1024 }
  0x14   :  { %s28_s27 = sshll.u32 %s602_s26, 4  ;;  %p550_p8 = scmp.ne.s32.totalorder %s697_s1, %s549_s30  ;;  %s29_s27 = int_to_ptr.vmem [resolvable:$true] %s28_s27 }
  0x15   :  { %p553_p9 = scmp.lt.u32.totalorder %s549_s30, %s697_s1 }
  0x17   :  { %p555_p10 = pnand %p553_p9, %p550_p8 }
  0x19   :  { %558 = shalt.err (!%p555_p10)
}
  0x1a   :  { %s559_s8 = scalar_lea.vmem %s29_s27, 1024  ;;  %p564_p12 = scmp.lt.s32.totalorder %s29_s27, %s29_s27 }
  0x1b   :  { %p560_p11 = scmp.ne.s32.totalorder %s29_s27, %s559_s8  ;;  %p565_p13 = scmp.lt.s32.totalorder %s559_s8, %s559_s8 }
  0x1d   :  { %p566_p0 = por %p565_p13, %p564_p12 }
  0x1f   :  { %p567_p1 = pnand %p566_p0, %p560_p11 }
  0x21   :  { %570 = shalt.err (!%p567_p1)
}
  0x22   :  { %34 = dma.hbm_to_vmem [thread:$0]  %s697_s1, 1024, %s29_s27, [#allocation6], %s600_s22, %s600_s22, %s601_s23  }
  0x23   :  { %593 = dma.done.wait [#allocation3], 832  }
  0x24   :  { %594 = vsyncadd [#allocation3], 4294966464 }
  0x25   :  { %595 = dma.done.wait [#allocation6], 1024  }
  0x26   :  { %596 = vsyncadd [#allocation6], 4294966272  ;;  %v603_v0 = vmov 0.0   ;;  %vm604_vm0 = vmmov 0   ;;  %v512_v1 = vld [vmem:[#allocation5] sm:$0xff]   ;;  %v513_v2 = vld [vmem:[#allocation5 + $0x8] sm:$0xff]  }
  0x27   :  { %445 = vmatprep.subr.bf16.mxu0 %v603_v0  ;;  %489 = vmatprep.subr.bf16.mxu1 %v603_v0  ;;  %v514_v3 = vld [vmem:[#allocation5 + $0x10] sm:$0xff]   ;;  %v515_v4 = vld [vmem:[#allocation5 + $0x18] sm:$0xff]   ;;  %v516_v5 = vld [vmem:[#allocation5 + $0x20] sm:$0xff]  }
  0x28   :  { %461 = vmatprep.mubr.msk.bf16.mxu0 %vm604_vm0, %v603_v0  ;;  %477 = vmatprep.mubr.msk.bf16.mxu1 %vm604_vm0, %v603_v0  ;;  %v517_v6 = vld [vmem:[#allocation5 + $0x28] sm:$0xff]   ;;  %v518_v7 = vld [vmem:[#allocation5 + $0x30] sm:$0xff]   ;;  %v519_v8 = vld [vmem:[#allocation5 + $0x38] sm:$0xff]  }
  0x29   :  { %446 = vmatpush3.bf16.msra.mxu0 %v512_v1  ;;  %497 = vmatpush3.bf16.msra.mxu1 %v512_v1  ;;  %v520_v9 = vld [vmem:[#allocation2] sm:$0xff]   ;;  %v522_v11 = vld [vmem:[#allocation2 + $0x8] sm:$0xff]   ;;  %v524_v13 = vld [vmem:[#allocation2 + $0x10] sm:$0xff]  }
  0x2a   :  { %447 = vmatprep.subr.bf16.mxu0 %v603_v0  ;;  %490 = vmatprep.subr.bf16.mxu1 %v603_v0  ;;  %v521_v10 = vld [vmem:[#allocation2 + $0x20] sm:$0xff]   ;;  %v523_v12 = vld [vmem:[#allocation2 + $0x28] sm:$0xff]   ;;  %v525_v14 = vld [vmem:[#allocation2 + $0x30] ss:$0 sps:$4 sm:$0x11]  }
  0x2b   :  { %v526_v15 = vld [vmem:[#allocation2 + $0x18] sm:$0xff]   ;;  %v666_v16 = vld [vmem:[%s698_s2] ss:$0 sm:$0xff]  ;;  %s605_s2 = smov [#allocation7]  }
  0x2c   :  { %s340_s11 = sshll.u32 %s605_s2, 4  ;;  %s341_s11 = int_to_ptr.vmem [resolvable:$true] %s340_s11 }
  0x2d   :  { %448 = vmatpush3.bf16.msra.mxu0 %v513_v2  ;;  %498 = vmatpush3.bf16.msra.mxu1 %v513_v2  ;;  %s571_s12 = scalar_lea.vmem %s341_s11, 832  ;;  %p576_p3 = scmp.lt.s32.totalorder %s341_s11, %s341_s11 }
  0x2e   :  { %449 = vmatprep.subr.bf16.mxu0 %v603_v0  ;;  %491 = vmatprep.subr.bf16.mxu1 %v603_v0  ;;  %p572_p2 = scmp.ne.s32.totalorder %s341_s11, %s571_s12  ;;  %p577_p4 = scmp.lt.s32.totalorder %s571_s12, %s571_s12 }
  0x30   :  { %p578_p5 = por %p577_p4, %p576_p3 }
  0x31   :  { %450 = vmatpush3.bf16.msra.mxu0 %v514_v3  ;;  %499 = vmatpush3.bf16.msra.mxu1 %v514_v3 }
  0x32   :  { %451 = vmatprep.subr.bf16.mxu0 %v603_v0  ;;  %492 = vmatprep.subr.bf16.mxu1 %v603_v0  ;;  %p579_p6 = pnand %p578_p5, %p572_p2 }
  0x35   :  { %452 = vmatpush3.bf16.msra.mxu0 %v515_v4  ;;  %500 = vmatpush3.bf16.msra.mxu1 %v515_v4 }
  0x36   :  { %453 = vmatprep.subr.bf16.mxu0 %v603_v0  ;;  %493 = vmatprep.subr.bf16.mxu1 %v603_v0 }
  0x39   :  { %454 = vmatpush3.bf16.msra.mxu0 %v516_v5  ;;  %501 = vmatpush3.bf16.msra.mxu1 %v516_v5 }
  0x3a   :  { %455 = vmatprep.subr.bf16.mxu0 %v603_v0  ;;  %494 = vmatprep.subr.bf16.mxu1 %v603_v0 }
  0x3d   :  { %456 = vmatpush3.bf16.msra.mxu0 %v517_v6  ;;  %502 = vmatpush3.bf16.msra.mxu1 %v517_v6 }
  0x3e   :  { %457 = vmatprep.subr.bf16.mxu0 %v603_v0  ;;  %495 = vmatprep.subr.bf16.mxu1 %v603_v0 }
  0x41   :  { %458 = vmatpush3.bf16.msra.mxu0 %v518_v7  ;;  %503 = vmatpush3.bf16.msra.mxu1 %v518_v7 }
  0x42   :  { %459 = vmatprep.subr.bf16.mxu0 %v603_v0  ;;  %496 = vmatprep.subr.bf16.mxu1 %v603_v0 }
  0x45   :  { %460 = vmatpush3.bf16.msra.mxu0 %v519_v8  ;;  %504 = vmatpush3.bf16.msra.mxu1 %v519_v8 }
  0x48   :  { %462 = vmatmul.mubr.bf16.vlgmr.msra.gmra.mrb[0].mxu0 %v520_v9  ;;  %478 = vmatmul.mubr.bf16.vlgmr.msra.gmra.mrb[0].mxu1 %v521_v10 }
  0x49   :  { %465 = vmatprep.mubr.msk.bf16.mxu0 %vm604_vm0, %v603_v0  ;;  %481 = vmatprep.mubr.msk.bf16.mxu1 %vm604_vm0, %v603_v0 }
  0x50   :  { %466 = vmatmul.mubr.bf16.gmra.mrb[4].mxu0 %v522_v11  ;;  %482 = vmatmul.mubr.bf16.gmra.mrb[4].mxu1 %v523_v12 }
  0x51   :  { %469 = vmatprep.mubr.msk.bf16.mxu0 %vm604_vm0, %v603_v0  ;;  %485 = vmatprep.mubr.msk.bf16.mxu1 %vm604_vm0, %v603_v0 }
  0x58   :  { %470 = vmatmul.mubr.bf16.gmra.mrb[8].mxu0 %v524_v13  ;;  %486 = vmatmul.mubr.bf16.gmra.mrb[8].mxu1 %v525_v14 }
  0x59   :  { %473 = vmatprep.mubr.msk.bf16.mxu0 %vm604_vm0, %v603_v0 }
  0x60   :  { %474 = vmatmul.mubr.bf16.gmra.mrb[12].mxu0 %v526_v15 }
 0x11b   :  { %v202_v17 = vpop.f32.mrb[0].mxu0  ;;  %v234_v18 = vpop.f32.mrb[0].mxu1 }
 0x11c   :  { %v203_v19 = vadd.f32 %v666_v16, %v202_v17  ;;  %v463_v20 = vpop.f32.mrb[1].mxu0  ;;  %v235_v21 = vadd.f32 %v666_v16, %v234_v18  ;;  %v479_v22 = vpop.f32.mrb[1].mxu1 }
 0x11d   :  { %v205_v23 = vpop.f32.mrb[2].mxu0  ;;  %v237_v24 = vpop.f32.mrb[2].mxu1 }
 0x11e   :  { %v206_v25 = vadd.f32 %v666_v16, %v205_v23  ;;  %v464_v26 = vpop.f32.mrb[3].mxu0  ;;  %v264_v27 = vmax.f32 %v235_v21, 0.0  ;;  %v238_v28 = vadd.f32 %v666_v16, %v237_v24  ;;  %v480_v29 = vpop.f32.mrb[3].mxu1  ;;  %v256_v30 = vmax.f32 %v203_v19, 0.0 }
 0x120   :  { %v257_v31 = vmax.f32 %v206_v25, 0.0  ;;  %v265_v32 = vmax.f32 %v238_v28, 0.0 }
 0x122   :  { %v398_v33 = vpack.c.bf16 %v257_v31, %v256_v30  ;;  %v418_v34 = vpack.c.bf16 %v265_v32, %v264_v27 }
 0x123   :  { %v210_v35 = vpop.f32.mrb[4].mxu0  ;;  %v242_v36 = vpop.f32.mrb[4].mxu1 }
 0x124   :  { %399 = vst [vmem:[#allocation7] sm:$0xff] %v398_v33   ;;  %v211_v37 = vadd.f32 %v666_v16, %v210_v35  ;;  %v467_v38 = vpop.f32.mrb[5].mxu0  ;;  %428 = vst [vmem:[#allocation7 + $0x20] sm:$0xff] %v418_v34   ;;  %v243_v39 = vadd.f32 %v666_v16, %v242_v36  ;;  %v483_v40 = vpop.f32.mrb[5].mxu1 }
 0x125   :  { %v213_v41 = vpop.f32.mrb[6].mxu0  ;;  %v245_v42 = vpop.f32.mrb[6].mxu1 }
 0x126   :  { %v214_v43 = vadd.f32 %v666_v16, %v213_v41  ;;  %v468_v44 = vpop.f32.mrb[7].mxu0  ;;  %v266_v45 = vmax.f32 %v243_v39, 0.0  ;;  %v246_v46 = vadd.f32 %v666_v16, %v245_v42  ;;  %v484_v47 = vpop.f32.mrb[7].mxu1  ;;  %v258_v48 = vmax.f32 %v211_v37, 0.0 }
 0x128   :  { %v259_v49 = vmax.f32 %v214_v43, 0.0  ;;  %v267_v50 = vmax.f32 %v246_v46, 0.0 }
 0x12a   :  { %v403_v51 = vpack.c.bf16 %v259_v49, %v258_v48  ;;  %v423_v52 = vpack.c.bf16 %v267_v50, %v266_v45 }
 0x12b   :  { %v218_v53 = vpop.f32.mrb[8].mxu0  ;;  %v250_v54 = vpop.f32.mrb[8].mxu1 }
 0x12c   :  { %425 = vst [vmem:[#allocation7 + $0x8] sm:$0xff] %v403_v51   ;;  %v219_v55 = vadd.f32 %v666_v16, %v218_v53  ;;  %v471_v56 = vpop.f32.mrb[9].mxu0  ;;  %429 = vst [vmem:[#allocation7 + $0x28] sm:$0xff] %v423_v52   ;;  %v251_v57 = vadd.f32 %v666_v16, %v250_v54  ;;  %v487_v58 = vpop.f32.mrb[9].mxu1 }
 0x12d   :  { %v221_v59 = vpop.f32.mrb[10].mxu0  ;;  %v253_v60 = vpop.f32.mrb[10].mxu1 }
 0x12e   :  { %v222_v61 = vadd.f32 %v666_v16, %v221_v59  ;;  %v472_v62 = vpop.f32.mrb[11].mxu0  ;;  %v268_v63 = vmax.f32 %v251_v57, 0.0  ;;  %v488_v0 = vpop.f32.mrb[11].mxu1  ;;  %v260_v1 = vmax.f32 %v219_v55, 0.0 }
 0x130   :  { %v261_v2 = vmax.f32 %v222_v61, 0.0  ;;  %v394_v3 = vpack.c.bf16 %v268_v63, %v268_v63 }
 0x132   :  { %v408_v4 = vpack.c.bf16 %v261_v2, %v260_v1  ;;  %334 = vst [vmem:[#allocation7 + $0x30] sm:$0x1] %v394_v3 }
 0x133   :  { %v226_v5 = vpop.f32.mrb[12].mxu0 }
 0x134   :  { %426 = vst [vmem:[#allocation7 + $0x10] sm:$0xff] %v408_v4   ;;  %v227_v6 = vadd.f32 %v666_v16, %v226_v5  ;;  %v475_v7 = vpop.f32.mrb[13].mxu0 }
 0x135   :  { %v229_v8 = vpop.f32.mrb[14].mxu0 }
 0x136   :  { %v230_v9 = vadd.f32 %v666_v16, %v229_v8  ;;  %v476_v10 = vpop.f32.mrb[15].mxu0  ;;  %v262_v11 = vmax.f32 %v227_v6, 0.0 }
 0x138   :  { %v263_v12 = vmax.f32 %v230_v9, 0.0 }
 0x13a   :  { %v413_v13 = vpack.c.bf16 %v263_v12, %v262_v11 }
 0x13c   :  { %427 = vst [vmem:[#allocation7 + $0x18] sm:$0xff] %v413_v13  }
 0x13d   :  { %582 = shalt.err (!%p579_p6)
}
 0x13e   :  { %s583_s15 = scalar_lea.hbm %s699_s3, 832 }
 0x13f   :  { %p584_p7 = scmp.ne.s32.totalorder %s699_s3, %s583_s15  ;;  %p587_p8 = scmp.lt.u32.totalorder %s583_s15, %s699_s3 }
 0x141   :  { %p589_p9 = pnand %p587_p8, %p584_p7 }
 0x143   :  { %592 = shalt.err (!%p589_p9)
}
 0x144   :  { %346 = dma.vmem_to_hbm [thread:$0]  %s341_s11, 832, %s699_s3, [#allocation4], %s600_s22, %s600_s22, %s601_s23  }
 0x145   :  { %597 = dma.done.wait [#allocation4], 832  }
 0x146   :  { %598 = vsyncadd [#allocation4], 4294966464 }
 0x147   :  { %350 = vsyncpa [#allocation3], 1 }
 0x148   :  { %351 = vsyncpa [#allocation6], 1 }
 0x149   :  { %352 = vsyncpa [#allocation4], 1 }

</bundles_post_ra>
